<compile_context>
chip_gen: v6e
topology: v6e:2x2x1
jax: 0.10.0
libtpu: 0.0.40
codegen_flags: <defaults>
</compile_context>

<pallas_src>
import functools

import numpy as np
import jax
import jax.numpy as jnp
from jax import lax
from jax.experimental import pallas as pl
from jax.experimental.pallas import tpu as pltpu

VMEM_SPEC = pl.BlockSpec(memory_space=pltpu.MemorySpace.VMEM)


# ----------------------------------------------------------------------------
# Fused kernel: the entire CNN forward in one pallas_call, zero scratch stores
# ----------------------------------------------------------------------------
def _cnn_fused_kernel(*refs, n_conv, num_linear, pool_ks):
    """refs = [x2d,
               (T, bias, S) per conv layer,
               (W, b) per linear layer,
               out]

    Activation layout: rows = b*H + h, cols = w*C + c (padded to a multiple of
    128 lanes after the first conv layer; pad columns are exact zeros).
    """
    n_in = 1 + 3 * n_conv + 2 * num_linear
    in_refs = refs[:n_in]
    out_ref = refs[n_in]

    x_ref = in_refs[0]
    conv_refs = [(in_refs[1 + 3 * l], in_refs[2 + 3 * l], in_refs[3 + 3 * l])
                 for l in range(n_conv)]
    base = 1 + 3 * n_conv
    lin_refs = [(in_refs[base + 2 * l], in_refs[base + 2 * l + 1])
                for l in range(num_linear)]

    # ---- conv + max-pool layers (shape-driven; fully statically unrolled) ----
    cur = x_ref[...]                               # (B*H0, W0*C0) bf16
    for l in range(n_conv):
        t_ref, bias_ref, s_ref = conv_refs[l]
        kh_taps = t_ref.shape[0]                   # conv kernel height
        rblk = t_ref.shape[2] // pool_ks           # 128-aligned residue block
        rows = cur.shape[0]                        # B * H_in
        rv = rows - kh_taps + 1

        # Convolution: one full-slab MXU matmul per kernel row; the kh taps are
        # combined with a static sublane shift (value slice) + add.
        acc = None
        for kh in range(kh_taps):
            part = jnp.dot(cur, t_ref[kh], preferred_element_type=jnp.float32)
            part = part[kh:kh + rv, :]             # shift by kh rows (XLU)
            acc = part if acc is None else acc + part

        # W-direction max-pool = max over the lane-aligned residue blocks.
        pw = acc[:, 0:rblk]
        for r in range(1, pool_ks):
            pw = jnp.maximum(pw, acc[:, r * rblk:(r + 1) * rblk])
        pw = pw + bias_ref[...]                    # bias hoisted: once per layer

        # H-direction max-pool: adjacent-rows max, then row compaction via a
        # precomputed 0/1 selection matmul (keeps everything in vregs; the last
        # conv's S also reorders rows to (hq, b) for the flattened linear head).
        radj = rv - pool_ks + 1
        adj = pw[0:radj, :]
        for a in range(1, pool_ks):
            adj = jnp.maximum(adj, pw[a:a + radj, :])
        pooled = jnp.dot(s_ref[...], adj.astype(jnp.bfloat16),
                         preferred_element_type=jnp.float32)
        cur = pooled.astype(jnp.bfloat16) if l < n_conv - 1 else pooled

    # ---- linear head (+ relu) and softmax -----------------------------------
    # First linear consumes the (hq, b)-ordered pooled rows directly; its weight
    # was pre-split per hq (flatten folded into the weight layout at prep time).
    w0_ref, b0_ref = lin_refs[0]
    hp_last = w0_ref.shape[0]
    bsz = cur.shape[0] // hp_last
    y = None
    for hq in range(hp_last):
        a_hq = cur[hq * bsz:(hq + 1) * bsz, :].astype(jnp.bfloat16)
        part = jnp.dot(a_hq, w0_ref[hq], preferred_element_type=jnp.float32)
        y = part if y is None else y + part
    y = y + b0_ref[...]

    for l in range(1, num_linear):
        w_ref, b_ref = lin_refs[l]
        a = jnp.maximum(y, 0.0).astype(jnp.bfloat16)            # relu
        y = jnp.dot(a, w_ref[...], preferred_element_type=jnp.float32) + b_ref[...]

    z = y - jnp.max(y, axis=-1, keepdims=True)
    e = jnp.exp(z)
    out_ref[...] = (e / jnp.sum(e, axis=-1, keepdims=True)).astype(out_ref.dtype)


# ----------------------------------------------------------------------------
# One-time parameter preparation (host-side, outside the jitted hot path)
# ----------------------------------------------------------------------------
def prepare_params(params, image_hw, pool_ks, batch):
    """Convert PyTorch-layout params into kernel operands.

    Returns (ops, n_conv, num_linear); `ops` is a flat tuple of arrays in the
    kernel's input order:  [T, bias, S] per conv layer, then [W, b] per linear.
    """
    assert len(params["convs"]) >= 1 and len(params["linears"]) >= 1
    n_conv = len(params["convs"])
    H_in, W_in = image_hw
    C_in = int(np.asarray(params["convs"][0][0]).shape[1])
    rows = batch * H_in                 # rows of the current activation slab
    kpad = W_in * C_in                  # (padded) column count of the slab
    ops = []

    for l, (w, b) in enumerate(params["convs"]):
        w = np.asarray(w, np.float32)   # (C_out, C_in, KH, KW)
        b = np.asarray(b, np.float32)   # (C_out,)
        C_out, c_in_w, KH, KW = w.shape
        assert c_in_w == C_in
        Ho, Wo = H_in - KH + 1, W_in - KW + 1
        Hp, Wp = Ho // pool_ks, Wo // pool_ks
        assert Hp >= 1 and Wp >= 1
        rblk = max(128, -(-(Wp * C_out) // 128) * 128)  # lane-aligned residue block

        # Block-Toeplitz weight, one (kpad x pool_ks*rblk) matrix per kernel row.
        # Column r*rblk + q*C_out + c holds the conv output at wo = q*pool_ks + r,
        # channel c; pad rows/cols are zero so padded activation columns are inert.
        T = np.zeros((KH, kpad, pool_ks * rblk), np.float32)
        for kh in range(KH):
            for kw in range(KW):
                blk = w[:, :, kh, kw].T               # (C_in, C_out)
                for r in range(pool_ks):
                    for q in range(Wp):
                        win = q * pool_ks + r + kw    # input column (w) index
                        T[kh, win * C_in:(win + 1) * C_in,
                          r * rblk + q * C_out: r * rblk + (q + 1) * C_out] = blk
        bias_pad = np.zeros((1, rblk), np.float32)
        bias_pad[0, :Wp * C_out] = np.tile(b, Wp)

        # 0/1 selection matrix implementing the H-pool row gather.  Intermediate
        # layers emit rows in (b, hq) order (the next conv's layout); the last
        # conv emits (hq, b) order so the flatten folds into the first linear.
        rv = rows - KH + 1
        radj = rv - pool_ks + 1
        last = (l == n_conv - 1)
        S = np.zeros((batch * Hp, radj), np.float32)
        for bb in range(batch):
            for hq in range(Hp):
                row = hq * batch + bb if last else bb * Hp + hq
                S[row, bb * H_in + pool_ks * hq] = 1.0

        ops += [jnp.asarray(T, jnp.bfloat16), jnp.asarray(bias_pad),
                jnp.asarray(S, jnp.bfloat16)]
        H_in, W_in, C_in = Hp, Wp, C_out
        rows, kpad = batch * Hp, rblk

    # ---- linear head: pre-transpose to (in, out); the first linear is split
    # per hq and row-permuted so PyTorch's NCHW x.view(batch,-1) is preserved.
    Hp, Wp, C = H_in, W_in, C_in
    rblk_last = kpad
    w0, b0 = params["linears"][0]
    w0 = np.asarray(w0, np.float32)
    b0 = np.asarray(b0, np.float32)
    out0 = w0.shape[0]
    assert w0.shape[1] == Hp * Wp * C
    wt = w0.T.reshape(C, Hp, Wp, out0)                     # NCHW-flat rows: (c, h, w)
    blk = np.transpose(wt, (1, 2, 0, 3)).reshape(Hp, Wp * C, out0)
    W0 = np.zeros((Hp, rblk_last, out0), np.float32)       # pad rows -> aligned K
    W0[:, :Wp * C, :] = blk
    ops += [jnp.asarray(W0, jnp.bfloat16), jnp.asarray(b0.reshape(1, -1))]
    for (w, b) in params["linears"][1:]:
        w = np.asarray(w, np.float32)
        b = np.asarray(b, np.float32)
        ops += [jnp.asarray(w.T, jnp.bfloat16), jnp.asarray(b.reshape(1, -1))]
    return tuple(ops), n_conv, len(params["linears"])


# ----------------------------------------------------------------------------
# Forward wrapper (single pallas_call, no grid needed at these sizes)
# ----------------------------------------------------------------------------
def cnn_forward(x_nchw, ops, *, n_conv, num_linear, pool_ks):
    B, C0, H, W = x_nchw.shape
    # Layout glue (one tiny XLA op): NCHW -> rows (b*h), columns (w*c), bf16.
    x2d = jnp.transpose(x_nchw, (0, 2, 3, 1)).reshape(B * H, W * C0)
    x2d = x2d.astype(jnp.bfloat16)
    num_classes = ops[-2].shape[-1]

    kernel = functools.partial(_cnn_fused_kernel, n_conv=n_conv,
                               num_linear=num_linear, pool_ks=pool_ks)
    return pl.pallas_call(
        kernel,
        out_shape=jax.ShapeDtypeStruct((B, num_classes), jnp.float32),
        in_specs=[VMEM_SPEC] * (1 + len(ops)),
        out_specs=VMEM_SPEC,
        compiler_params=pltpu.CompilerParams(vmem_limit_bytes=32 * 1024 * 1024),
    )(x2d, *ops)


# ----------------------------------------------------------------------------
# Pure-JAX reference (mirrors the PyTorch module) and synthetic parameters
# ----------------------------------------------------------------------------
def reference_forward(x_nchw, params, pool_ks):
    hi = lax.Precision.HIGHEST
    x = x_nchw
    for (w, b) in params["convs"]:
        x = lax.conv_general_dilated(
            x, w, window_strides=(1, 1), padding="VALID",
            dimension_numbers=("NCHW", "OIHW", "NCHW"), precision=hi)
        x = x + b.reshape(1, -1, 1, 1)
        n, c, h, ww = x.shape
        hp, wp = h // pool_ks, ww // pool_ks
        x = x[:, :, :hp * pool_ks, :wp * pool_ks]
        x = x.reshape(n, c, hp, pool_ks, wp, pool_ks).max(axis=(3, 5))
    x = x.reshape(x.shape[0], -1)
    for (w, b) in params["linears"][:-1]:
        x = jnp.maximum(jnp.dot(x, w.T, precision=hi) + b, 0.0)
    w, b = params["linears"][-1]
    return jax.nn.softmax(jnp.dot(x, w.T, precision=hi) + b, axis=1)


def init_params(key, conv_dims, linear_dims, conv_ks):
    """Deterministic synthetic params with the same shapes as the nn.Module."""
    params = {"convs": [], "linears": []}
    for i in range(len(conv_dims) - 1):
        key, kw, kb = jax.random.split(key, 3)
        w = 0.1 * jax.random.normal(
            kw, (conv_dims[i + 1], conv_dims[i], conv_ks, conv_ks), dtype=jnp.float32)
        b = 0.1 * jax.random.normal(kb, (conv_dims[i + 1],), dtype=jnp.float32)
        params["convs"].append((w, b))
    for i in range(len(linear_dims) - 1):
        key, kw, kb = jax.random.split(key, 3)
        w = 0.1 * jax.random.normal(
            kw, (linear_dims[i + 1], linear_dims[i]), dtype=jnp.float32)
        b = 0.1 * jax.random.normal(kb, (linear_dims[i + 1],), dtype=jnp.float32)
        params["linears"].append((w, b))
    return params


if __name__ == "__main__":
    conv_dims = [4, 8, 16]      # in-channels, then filters per conv
    conv_ks = 3
    pool_ks = 2
    H = W = 16
    # spatial trace: 16 --conv3--> 14 --pool2--> 7 --conv3--> 5 --pool2--> 2
    linear_dims = [conv_dims[-1] * 2 * 2, 32, 10]
    batch = 2

    key = jax.random.PRNGKey(0)
    kx, kp = jax.random.split(key)
    x = jax.random.normal(kx, (batch, conv_dims[0], H, W), dtype=jnp.float32)
    params = init_params(kp, conv_dims, linear_dims, conv_ks)

    ops, n_conv, num_linear = prepare_params(params, (H, W), pool_ks, batch)
    fwd = jax.jit(functools.partial(cnn_forward, n_conv=n_conv,
                                    num_linear=num_linear, pool_ks=pool_ks))
    out = fwd(x, ops)
    jax.block_until_ready(out)

    assert out.shape == (batch, linear_dims[-1])
    assert bool(jnp.all(jnp.isfinite(out)))
    # softmax rows sum to 1
    assert bool(jnp.allclose(jnp.sum(out, axis=1), 1.0, atol=1e-5))
    # numerics match the pure-JAX (f32, HIGHEST precision) reference of the
    # PyTorch forward; bf16 MXU inputs with f32 accumulation stay well inside
    # this tolerance at these magnitudes.
    ref = reference_forward(x, params, pool_ks)
    assert bool(jnp.allclose(out, ref, atol=3e-3))
    print("KERNEL_OK")
</pallas_src>

<mosaic_0001>
module attributes {stable_mosaic.version = 11 : i64} {
  func.func @_cnn_fused_kernel(%arg0: memref<32x64xbf16, #tpu.memory_space<vmem>>, %arg1: memref<3x64x256xbf16, #tpu.memory_space<vmem>>, %arg2: memref<1x128xf32, #tpu.memory_space<vmem>>, %arg3: memref<14x29xbf16, #tpu.memory_space<vmem>>, %arg4: memref<3x128x256xbf16, #tpu.memory_space<vmem>>, %arg5: memref<1x128xf32, #tpu.memory_space<vmem>>, %arg6: memref<4x11xbf16, #tpu.memory_space<vmem>>, %arg7: memref<2x128x32xbf16, #tpu.memory_space<vmem>>, %arg8: memref<1x32xf32, #tpu.memory_space<vmem>>, %arg9: memref<32x10xbf16, #tpu.memory_space<vmem>>, %arg10: memref<1x10xf32, #tpu.memory_space<vmem>>, %arg11: memref<2x10xf32, #tpu.memory_space<vmem>>) attributes {dimension_semantics = [], scalar_prefetch = 0 : i64, scratch_operands = 0 : i64, tpu.core_type = #tpu.core_type<tc>} {
    %c0 = arith.constant 0 : index
    %c0_0 = arith.constant 0 : index
    %0 = vector.load %arg0[%c0, %c0_0] : memref<32x64xbf16, #tpu.memory_space<vmem>>, vector<32x64xbf16>
    %c0_1 = arith.constant 0 : index
    %c0_2 = arith.constant 0 : index
    %c0_3 = arith.constant 0 : index
    %1 = vector.load %arg1[%c0_1, %c0_2, %c0_3] : memref<3x64x256xbf16, #tpu.memory_space<vmem>>, vector<1x64x256xbf16>
    %2 = vector.shape_cast %1 : vector<1x64x256xbf16> to vector<64x256xbf16>
    %cst = arith.constant dense<0.000000e+00> : vector<32x256xf32>
    %3 = tpu.matmul %0, %2, %cst {dimension_numbers = #tpu.dot_dimension_numbers<[1], [0], [0], [1], [0, 0, 1, 1], [], []>} : vector<32x64xbf16>, vector<64x256xbf16>, vector<32x256xf32> -> vector<32x256xf32>
    %4 = vector.extract_strided_slice %3 {offsets = [0, 0], sizes = [30, 256], strides = [1, 1]} : vector<32x256xf32> to vector<30x256xf32>
    %c1 = arith.constant 1 : index
    %c0_4 = arith.constant 0 : index
    %c0_5 = arith.constant 0 : index
    %5 = vector.load %arg1[%c1, %c0_4, %c0_5] : memref<3x64x256xbf16, #tpu.memory_space<vmem>>, vector<1x64x256xbf16>
    %6 = vector.shape_cast %5 : vector<1x64x256xbf16> to vector<64x256xbf16>
    %cst_6 = arith.constant dense<0.000000e+00> : vector<32x256xf32>
    %7 = tpu.matmul %0, %6, %cst_6 {dimension_numbers = #tpu.dot_dimension_numbers<[1], [0], [0], [1], [0, 0, 1, 1], [], []>} : vector<32x64xbf16>, vector<64x256xbf16>, vector<32x256xf32> -> vector<32x256xf32>
    %8 = vector.extract_strided_slice %7 {offsets = [1, 0], sizes = [30, 256], strides = [1, 1]} : vector<32x256xf32> to vector<30x256xf32>
    %9 = arith.addf %4, %8 : vector<30x256xf32>
    %c2 = arith.constant 2 : index
    %c0_7 = arith.constant 0 : index
    %c0_8 = arith.constant 0 : index
    %10 = vector.load %arg1[%c2, %c0_7, %c0_8] : memref<3x64x256xbf16, #tpu.memory_space<vmem>>, vector<1x64x256xbf16>
    %11 = vector.shape_cast %10 : vector<1x64x256xbf16> to vector<64x256xbf16>
    %cst_9 = arith.constant dense<0.000000e+00> : vector<32x256xf32>
    %12 = tpu.matmul %0, %11, %cst_9 {dimension_numbers = #tpu.dot_dimension_numbers<[1], [0], [0], [1], [0, 0, 1, 1], [], []>} : vector<32x64xbf16>, vector<64x256xbf16>, vector<32x256xf32> -> vector<32x256xf32>
    %13 = vector.extract_strided_slice %12 {offsets = [2, 0], sizes = [30, 256], strides = [1, 1]} : vector<32x256xf32> to vector<30x256xf32>
    %14 = arith.addf %9, %13 : vector<30x256xf32>
    %15 = vector.extract_strided_slice %14 {offsets = [0, 0], sizes = [30, 128], strides = [1, 1]} : vector<30x256xf32> to vector<30x128xf32>
    %16 = vector.extract_strided_slice %14 {offsets = [0, 128], sizes = [30, 128], strides = [1, 1]} : vector<30x256xf32> to vector<30x128xf32>
    %17 = arith.maximumf %15, %16 : vector<30x128xf32>
    %c0_10 = arith.constant 0 : index
    %c0_11 = arith.constant 0 : index
    %18 = vector.load %arg2[%c0_10, %c0_11] : memref<1x128xf32, #tpu.memory_space<vmem>>, vector<1x128xf32>
    %19 = vector.broadcast %18 : vector<1x128xf32> to vector<30x128xf32>
    %20 = arith.addf %17, %19 : vector<30x128xf32>
    %21 = vector.extract_strided_slice %20 {offsets = [0, 0], sizes = [29, 128], strides = [1, 1]} : vector<30x128xf32> to vector<29x128xf32>
    %22 = vector.extract_strided_slice %20 {offsets = [1, 0], sizes = [29, 128], strides = [1, 1]} : vector<30x128xf32> to vector<29x128xf32>
    %23 = arith.maximumf %21, %22 : vector<29x128xf32>
    %c0_12 = arith.constant 0 : index
    %c0_13 = arith.constant 0 : index
    %24 = vector.load %arg3[%c0_12, %c0_13] : memref<14x29xbf16, #tpu.memory_space<vmem>>, vector<14x29xbf16>
    %25 = arith.truncf %23 : vector<29x128xf32> to vector<29x128xbf16>
    %cst_14 = arith.constant dense<0.000000e+00> : vector<14x128xf32>
    %26 = tpu.matmul %24, %25, %cst_14 {dimension_numbers = #tpu.dot_dimension_numbers<[1], [0], [0], [1], [0, 0, 1, 1], [], []>} : vector<14x29xbf16>, vector<29x128xbf16>, vector<14x128xf32> -> vector<14x128xf32>
    %27 = arith.truncf %26 : vector<14x128xf32> to vector<14x128xbf16>
    %c0_15 = arith.constant 0 : index
    %c0_16 = arith.constant 0 : index
    %c0_17 = arith.constant 0 : index
    %28 = vector.load %arg4[%c0_15, %c0_16, %c0_17] : memref<3x128x256xbf16, #tpu.memory_space<vmem>>, vector<1x128x256xbf16>
    %29 = vector.shape_cast %28 : vector<1x128x256xbf16> to vector<128x256xbf16>
    %cst_18 = arith.constant dense<0.000000e+00> : vector<14x256xf32>
    %30 = tpu.matmul %27, %29, %cst_18 {dimension_numbers = #tpu.dot_dimension_numbers<[1], [0], [0], [1], [0, 0, 1, 1], [], []>} : vector<14x128xbf16>, vector<128x256xbf16>, vector<14x256xf32> -> vector<14x256xf32>
    %31 = vector.extract_strided_slice %30 {offsets = [0, 0], sizes = [12, 256], strides = [1, 1]} : vector<14x256xf32> to vector<12x256xf32>
    %c1_19 = arith.constant 1 : index
    %c0_20 = arith.constant 0 : index
    %c0_21 = arith.constant 0 : index
    %32 = vector.load %arg4[%c1_19, %c0_20, %c0_21] : memref<3x128x256xbf16, #tpu.memory_space<vmem>>, vector<1x128x256xbf16>
    %33 = vector.shape_cast %32 : vector<1x128x256xbf16> to vector<128x256xbf16>
    %cst_22 = arith.constant dense<0.000000e+00> : vector<14x256xf32>
    %34 = tpu.matmul %27, %33, %cst_22 {dimension_numbers = #tpu.dot_dimension_numbers<[1], [0], [0], [1], [0, 0, 1, 1], [], []>} : vector<14x128xbf16>, vector<128x256xbf16>, vector<14x256xf32> -> vector<14x256xf32>
    %35 = vector.extract_strided_slice %34 {offsets = [1, 0], sizes = [12, 256], strides = [1, 1]} : vector<14x256xf32> to vector<12x256xf32>
    %36 = arith.addf %31, %35 : vector<12x256xf32>
    %c2_23 = arith.constant 2 : index
    %c0_24 = arith.constant 0 : index
    %c0_25 = arith.constant 0 : index
    %37 = vector.load %arg4[%c2_23, %c0_24, %c0_25] : memref<3x128x256xbf16, #tpu.memory_space<vmem>>, vector<1x128x256xbf16>
    %38 = vector.shape_cast %37 : vector<1x128x256xbf16> to vector<128x256xbf16>
    %cst_26 = arith.constant dense<0.000000e+00> : vector<14x256xf32>
    %39 = tpu.matmul %27, %38, %cst_26 {dimension_numbers = #tpu.dot_dimension_numbers<[1], [0], [0], [1], [0, 0, 1, 1], [], []>} : vector<14x128xbf16>, vector<128x256xbf16>, vector<14x256xf32> -> vector<14x256xf32>
    %40 = vector.extract_strided_slice %39 {offsets = [2, 0], sizes = [12, 256], strides = [1, 1]} : vector<14x256xf32> to vector<12x256xf32>
    %41 = arith.addf %36, %40 : vector<12x256xf32>
    %42 = vector.extract_strided_slice %41 {offsets = [0, 0], sizes = [12, 128], strides = [1, 1]} : vector<12x256xf32> to vector<12x128xf32>
    %43 = vector.extract_strided_slice %41 {offsets = [0, 128], sizes = [12, 128], strides = [1, 1]} : vector<12x256xf32> to vector<12x128xf32>
    %44 = arith.maximumf %42, %43 : vector<12x128xf32>
    %c0_27 = arith.constant 0 : index
    %c0_28 = arith.constant 0 : index
    %45 = vector.load %arg5[%c0_27, %c0_28] : memref<1x128xf32, #tpu.memory_space<vmem>>, vector<1x128xf32>
    %46 = vector.broadcast %45 : vector<1x128xf32> to vector<12x128xf32>
    %47 = arith.addf %44, %46 : vector<12x128xf32>
    %48 = vector.extract_strided_slice %47 {offsets = [0, 0], sizes = [11, 128], strides = [1, 1]} : vector<12x128xf32> to vector<11x128xf32>
    %49 = vector.extract_strided_slice %47 {offsets = [1, 0], sizes = [11, 128], strides = [1, 1]} : vector<12x128xf32> to vector<11x128xf32>
    %50 = arith.maximumf %48, %49 : vector<11x128xf32>
    %c0_29 = arith.constant 0 : index
    %c0_30 = arith.constant 0 : index
    %51 = vector.load %arg6[%c0_29, %c0_30] : memref<4x11xbf16, #tpu.memory_space<vmem>>, vector<4x11xbf16>
    %52 = arith.truncf %50 : vector<11x128xf32> to vector<11x128xbf16>
    %cst_31 = arith.constant dense<0.000000e+00> : vector<4x128xf32>
    %53 = tpu.matmul %51, %52, %cst_31 {dimension_numbers = #tpu.dot_dimension_numbers<[1], [0], [0], [1], [0, 0, 1, 1], [], []>} : vector<4x11xbf16>, vector<11x128xbf16>, vector<4x128xf32> -> vector<4x128xf32>
    %54 = vector.extract_strided_slice %53 {offsets = [0, 0], sizes = [2, 128], strides = [1, 1]} : vector<4x128xf32> to vector<2x128xf32>
    %55 = arith.truncf %54 : vector<2x128xf32> to vector<2x128xbf16>
    %c0_32 = arith.constant 0 : index
    %c0_33 = arith.constant 0 : index
    %c0_34 = arith.constant 0 : index
    %56 = vector.load %arg7[%c0_32, %c0_33, %c0_34] : memref<2x128x32xbf16, #tpu.memory_space<vmem>>, vector<1x128x32xbf16>
    %57 = vector.shape_cast %56 : vector<1x128x32xbf16> to vector<128x32xbf16>
    %cst_35 = arith.constant dense<0.000000e+00> : vector<2x32xf32>
    %58 = tpu.matmul %55, %57, %cst_35 {dimension_numbers = #tpu.dot_dimension_numbers<[1], [0], [0], [1], [0, 0, 1, 1], [], []>} : vector<2x128xbf16>, vector<128x32xbf16>, vector<2x32xf32> -> vector<2x32xf32>
    %59 = vector.extract_strided_slice %53 {offsets = [2, 0], sizes = [2, 128], strides = [1, 1]} : vector<4x128xf32> to vector<2x128xf32>
    %60 = arith.truncf %59 : vector<2x128xf32> to vector<2x128xbf16>
    %c1_36 = arith.constant 1 : index
    %c0_37 = arith.constant 0 : index
    %c0_38 = arith.constant 0 : index
    %61 = vector.load %arg7[%c1_36, %c0_37, %c0_38] : memref<2x128x32xbf16, #tpu.memory_space<vmem>>, vector<1x128x32xbf16>
    %62 = vector.shape_cast %61 : vector<1x128x32xbf16> to vector<128x32xbf16>
    %cst_39 = arith.constant dense<0.000000e+00> : vector<2x32xf32>
    %63 = tpu.matmul %60, %62, %cst_39 {dimension_numbers = #tpu.dot_dimension_numbers<[1], [0], [0], [1], [0, 0, 1, 1], [], []>} : vector<2x128xbf16>, vector<128x32xbf16>, vector<2x32xf32> -> vector<2x32xf32>
    %64 = arith.addf %58, %63 : vector<2x32xf32>
    %c0_40 = arith.constant 0 : index
    %c0_41 = arith.constant 0 : index
    %65 = vector.load %arg8[%c0_40, %c0_41] : memref<1x32xf32, #tpu.memory_space<vmem>>, vector<1x32xf32>
    %66 = vector.broadcast %65 : vector<1x32xf32> to vector<2x32xf32>
    %67 = arith.addf %64, %66 : vector<2x32xf32>
    %cst_42 = arith.constant 0.000000e+00 : f32
    %68 = vector.broadcast %cst_42 : f32 to vector<2x32xf32>
    %69 = arith.maximumf %67, %68 : vector<2x32xf32>
    %70 = arith.truncf %69 : vector<2x32xf32> to vector<2x32xbf16>
    %c0_43 = arith.constant 0 : index
    %c0_44 = arith.constant 0 : index
    %71 = vector.load %arg9[%c0_43, %c0_44] : memref<32x10xbf16, #tpu.memory_space<vmem>>, vector<32x10xbf16>
    %cst_45 = arith.constant dense<0.000000e+00> : vector<2x10xf32>
    %72 = tpu.matmul %70, %71, %cst_45 {dimension_numbers = #tpu.dot_dimension_numbers<[1], [0], [0], [1], [0, 0, 1, 1], [], []>} : vector<2x32xbf16>, vector<32x10xbf16>, vector<2x10xf32> -> vector<2x10xf32>
    %c0_46 = arith.constant 0 : index
    %c0_47 = arith.constant 0 : index
    %73 = vector.load %arg10[%c0_46, %c0_47] : memref<1x10xf32, #tpu.memory_space<vmem>>, vector<1x10xf32>
    %74 = vector.broadcast %73 : vector<1x10xf32> to vector<2x10xf32>
    %75 = arith.addf %72, %74 : vector<2x10xf32>
    %cst_48 = arith.constant dense<0xFF800000> : vector<2xf32>
    %76 = vector.multi_reduction <maximumf>, %75, %cst_48 [1] : vector<2x10xf32> to vector<2xf32>
    %77 = vector.shape_cast %76 : vector<2xf32> to vector<2x1xf32>
    %78 = vector.broadcast %77 : vector<2x1xf32> to vector<2x10xf32>
    %79 = arith.subf %75, %78 : vector<2x10xf32>
    %80 = math.exp %79 : vector<2x10xf32>
    %cst_49 = arith.constant dense<0.000000e+00> : vector<2xf32>
    %81 = vector.multi_reduction <add>, %80, %cst_49 [1] : vector<2x10xf32> to vector<2xf32>
    %82 = vector.shape_cast %81 : vector<2xf32> to vector<2x1xf32>
    %83 = vector.broadcast %82 : vector<2x1xf32> to vector<2x10xf32>
    %84 = arith.divf %80, %83 : vector<2x10xf32>
    %c0_50 = arith.constant 0 : index
    %c0_51 = arith.constant 0 : index
    %85 = vector.load %arg11[%c0_50, %c0_51] : memref<2x10xf32, #tpu.memory_space<vmem>>, vector<2x10xf32>
    tpu.vector_store %arg11[%c0_50, %c0_51], %84 {strides = array<i32>} : memref<2x10xf32, #tpu.memory_space<vmem>>, vector<2x10xf32>,
    return
  }
}

</mosaic_0001>

<bundles_post_ra>
// kernel: cnn_forward.1
= control target key start
LH: loop header
LB: loop body
LE: loop exit
PB: predicated region body
PF: predicated region fallthrough
CT: control target
= control target key end

     0   :  { %v1800_v2 = vmov 0   ;;  %vm102_vm0 = vcmask 523264   ;;  %s2236_s0 = inlined_call_operand.vmem [shape: bf16[32,64], index: 0, kind: input, shape index: {}]   ;;  %s2237_s1 = inlined_call_operand.vmem [shape: bf16[3,64,256], index: 1, kind: input, shape index: {}]   ;;  %s2238_s2 = inlined_call_operand.vmem [shape: f32[1,128], index: 2, kind: input, shape index: {}]   ;;  %s2239_s3 = inlined_call_operand.vmem [shape: bf16[14,29], index: 3, kind: input, shape index: {}]   ;;  %s2240_s4 = inlined_call_operand.vmem [shape: bf16[3,128,256], index: 4, kind: input, shape index: {}]   ;;  %s2241_s5 = inlined_call_operand.vmem [shape: f32[1,128], index: 5, kind: input, shape index: {}]   ;;  %s2242_s6 = inlined_call_operand.vmem [shape: bf16[4,11], index: 6, kind: input, shape index: {}]   ;;  %s2243_s7 = inlined_call_operand.vmem [shape: bf16[2,128,32], index: 7, kind: input, shape index: {}]   ;;  %s2244_s8 = inlined_call_operand.vmem [shape: f32[1,32], index: 8, kind: input, shape index: {}]   ;;  %s2245_s9 = inlined_call_operand.vmem [shape: bf16[32,10], index: 9, kind: input, shape index: {}]   ;;  %s2246_s10 = inlined_call_operand.vmem [shape: f32[1,10], index: 10, kind: input, shape index: {}]   ;;  %s2247_s11 = inlined_call_operand.hbm [shape: f32[2,10], index: 11, kind: output, shape index: {}]  }
   0x1   :  { %v1645_v0 = vld [vmem:[%s2237_s1 + $0x34] ss:$8 sps:$4 sm:$0xff]   ;;  %141 = vmatprep.mubr.bf16.mxu0 %v1800_v2  ;;  %243 = vmatprep.mubr.bf16.mxu1 %v1800_v2  ;;  %v1649_v3 = vld [vmem:[%s2237_s1 + $0x30] ss:$8 sps:$4 sm:$0xff]   ;;  %v1651_v5 = vld [vmem:[%s2237_s1 + $0x24] ss:$8 sps:$4 sm:$0xff]  }
   0x2   :  { %v1647_v1 = vld [vmem:[%s2237_s1 + $0x74] ss:$8 sps:$4 sm:$0xff]   ;;  %117 = vmatprep.subr.bf16.mxu0 %v1645_v0  ;;  %v1650_v4 = vld [vmem:[%s2237_s1 + $0x70] ss:$8 sps:$4 sm:$0xff]   ;;  %v1653_v6 = vld [vmem:[%s2237_s1 + $0x64] ss:$8 sps:$4 sm:$0xff]  }
   0x3   :  { %219 = vmatprep.subr.bf16.mxu1 %v1647_v1  ;;  %118 = vmatpush1.bf16.msra.mxu0 %v1649_v3  ;;  %v1655_v7 = vld [vmem:[%s2237_s1 + $0x20] ss:$8 sps:$4 sm:$0xff]   ;;  %v1657_v9 = vld [vmem:[%s2237_s1 + $0x14] ss:$8 sps:$4 sm:$0xff]   ;;  %v1661_v11 = vld [vmem:[%s2237_s1 + $0x10] ss:$8 sps:$4 sm:$0xff]  }
   0x4   :  { %220 = vmatpush1.bf16.msra.mxu1 %v1650_v4  ;;  %119 = vmatprep.subr.bf16.mxu0 %v1651_v5  ;;  %v1656_v8 = vld [vmem:[%s2237_s1 + $0x60] ss:$8 sps:$4 sm:$0xff]   ;;  %v1659_v10 = vld [vmem:[%s2237_s1 + $0x54] ss:$8 sps:$4 sm:$0xff]   ;;  %v1662_v12 = vld [vmem:[%s2237_s1 + $0x50] ss:$8 sps:$4 sm:$0xff]  }
   0x5   :  { %221 = vmatprep.subr.bf16.mxu1 %v1653_v6  ;;  %v1663_v13 = vld [vmem:[%s2237_s1 + $0x4] ss:$8 sps:$4 sm:$0xff]   ;;  %v1667_v15 = vld [vmem:[%s2237_s1] ss:$8 sps:$4 sm:$0xff]   ;;  %v1672_v17 = vld [vmem:[%s2237_s1 + $0xb4] ss:$8 sps:$4 sm:$0xff]  }
   0x6   :  { %v1665_v14 = vld [vmem:[%s2237_s1 + $0x44] ss:$8 sps:$4 sm:$0xff]   ;;  %v1668_v16 = vld [vmem:[%s2237_s1 + $0x40] ss:$8 sps:$4 sm:$0xff]   ;;  %v1670_v19 = vld [vmem:[%s2237_s1 + $0xb0] ss:$8 sps:$4 sm:$0xff]  }
   0x7   :  { %120 = vmatpush1.bf16.msra.mxu0 %v1655_v7  ;;  %v1669_v18 = vld [vmem:[%s2236_s0] sm:$0xff]   ;;  %v1679_v22 = vld [vmem:[%s2237_s1 + $0x94] ss:$8 sps:$4 sm:$0xff]   ;;  %v1676_v23 = vld [vmem:[%s2236_s0 + $0x8] sm:$0xff]  }
   0x8   :  { %222 = vmatpush1.bf16.msra.mxu1 %v1656_v8  ;;  %121 = vmatprep.subr.bf16.mxu0 %v1657_v9  ;;  %v1675_v20 = vld [vmem:[%s2237_s1 + $0xa4] ss:$8 sps:$4 sm:$0xff]   ;;  %v1673_v21 = vld [vmem:[%s2237_s1 + $0xa0] ss:$8 sps:$4 sm:$0xff]   ;;  %v1677_v24 = vld [vmem:[%s2237_s1 + $0x90] ss:$8 sps:$4 sm:$0xff]  }
   0x9   :  { %223 = vmatprep.subr.bf16.mxu1 %v1659_v10  ;;  %v1682_v25 = vld [vmem:[%s2237_s1 + $0x84] ss:$8 sps:$4 sm:$0xff]   ;;  %v1680_v26 = vld [vmem:[%s2237_s1 + $0x80] ss:$8 sps:$4 sm:$0xff]  }
   0xb   :  { %122 = vmatpush1.bf16.msra.mxu0 %v1661_v11 }
   0xc   :  { %224 = vmatpush1.bf16.msra.mxu1 %v1662_v12  ;;  %123 = vmatprep.subr.bf16.mxu0 %v1663_v13 }
   0xd   :  { %225 = vmatprep.subr.bf16.mxu1 %v1665_v14 }
   0xf   :  { %124 = vmatpush1.bf16.msra.mxu0 %v1667_v15 }
  0x10   :  { %226 = vmatpush1.bf16.msra.mxu1 %v1668_v16  ;;  %360 = vmatprep.subr.bf16.mxu0 %v1672_v17 }
  0x12   :  { %1392 = vmatmul.mubr.msk.bf16.vlgmr.msra.gmra.mxu0 %vm102_vm0, %v1669_v18 }
  0x13   :  { %1410 = vmatmul.mubr.msk.bf16.vlgmr.msra.gmra.mxu1 %vm102_vm0, %v1669_v18  ;;  %361 = vmatpush1.bf16.msra.mxu0 %v1670_v19 }
  0x14   :  { %151 = vmatprep.mubr.bf16.mxu0 %v1800_v2  ;;  %362 = vmatprep.subr.bf16.mxu0 %v1675_v20 }
  0x15   :  { %253 = vmatprep.mubr.bf16.mxu1 %v1800_v2 }
  0x17   :  { %363 = vmatpush1.bf16.msra.mxu0 %v1673_v21 }
  0x18   :  { %364 = vmatprep.subr.bf16.mxu0 %v1679_v22 }
  0x1a   :  { %1393 = vmatmul.mubr.msk.bf16.gmra.mxu0 %vm102_vm0, %v1676_v23 }
  0x1b   :  { %1411 = vmatmul.mubr.msk.bf16.gmra.mxu1 %vm102_vm0, %v1676_v23  ;;  %365 = vmatpush1.bf16.msra.mxu0 %v1677_v24 }
  0x1c   :  { %384 = vmatprep.mubr.bf16.mxu0 %v1800_v2  ;;  %366 = vmatprep.subr.bf16.mxu0 %v1682_v25 }
  0x1f   :  { %367 = vmatpush1.bf16.msra.mxu0 %v1680_v26 }
  0x22   :  { %1428 = vmatmul.mubr.msk.bf16.vlgmr.msra.gmra.mxu0 %vm102_vm0, %v1669_v18 }
  0x23   :  { %394 = vmatprep.mubr.bf16.mxu0 %v1800_v2 }
  0x2a   :  { %1429 = vmatmul.mubr.msk.bf16.gmra.mxu0 %vm102_vm0, %v1676_v23 }
  0x2b   :  { %666 = vmatprep.mubr.bf16.mxu0 %v1800_v2 }
  0x2c   :  { %16 = vsyncpa [#allocation3], 0  ;;  %v1801_v27 = vmov 0.0   ;;  %vm1802_vm1 = vmmov 0   ;;  %v1684_v28 = vld [vmem:[%s2240_s4 + $0x70] ss:$8 sps:$4 sm:$0xff]  }
  0x2d   :  { %1578 = vmatprep.subr.bf16.mxu1 %v1801_v27  ;;  %1582 = vmatprep.mubr.msk.bf16.mxu1 %vm1802_vm1, %v1801_v27  ;;  %v1686_v29 = vld [vmem:[%s2240_s4 + $0x74] ss:$8 sps:$4 sm:$0xff]   ;;  %v1692_v30 = vld [vmem:[%s2240_s4 + $0x64] ss:$8 sps:$4 sm:$0xff]   ;;  %v1690_v31 = vld [vmem:[%s2240_s4 + $0x60] ss:$8 sps:$4 sm:$0xff]  }
  0x2e   :  { %634 = vmatprep.subr.bf16.mxu0 %v1686_v29  ;;  %v1698_v32 = vld [vmem:[%s2240_s4 + $0x54] ss:$8 sps:$4 sm:$0xff]   ;;  %v1696_v33 = vld [vmem:[%s2240_s4 + $0x50] ss:$8 sps:$4 sm:$0xff]   ;;  %v1704_v34 = vld [vmem:[%s2240_s4 + $0x44] ss:$8 sps:$4 sm:$0xff]  }
  0x2f   :  { %635 = vmatpush1.bf16.msra.mxu0 %v1684_v28  ;;  %v1702_v35 = vld [vmem:[%s2240_s4 + $0x40] ss:$8 sps:$4 sm:$0xff]   ;;  %v1710_v36 = vld [vmem:[%s2240_s4 + $0x34] ss:$8 sps:$4 sm:$0xff]   ;;  %v1708_v37 = vld [vmem:[%s2240_s4 + $0x30] ss:$8 sps:$4 sm:$0xff]  }
  0x30   :  { %636 = vmatprep.subr.bf16.mxu0 %v1692_v30  ;;  %v1716_v38 = vld [vmem:[%s2240_s4 + $0x24] ss:$8 sps:$4 sm:$0xff]   ;;  %v1714_v39 = vld [vmem:[%s2240_s4 + $0x20] ss:$8 sps:$4 sm:$0xff]   ;;  %v1722_v40 = vld [vmem:[%s2240_s4 + $0x14] ss:$8 sps:$4 sm:$0xff]  }
  0x31   :  { %v1720_v41 = vld [vmem:[%s2240_s4 + $0x10] ss:$8 sps:$4 sm:$0xff]   ;;  %vm272_vm2 = vcmask 1046528   ;;  %vm413_vm3 = vcmask 1045504   ;;  %vm487_vm4 = vcmask 236544   ;;  %vm1019_vm5 = vcmask 1044480  }
  0x32   :  { %vm1015_vm6 = vcmask 89088   ;;  %vm1311_vm7 = vcmask 261120   ;;  %vm1355_vm8 = vcmask 74752  }
  0x33   :  { %637 = vmatpush1.bf16.msra.mxu0 %v1690_v31 }
  0x34   :  { %638 = vmatprep.subr.bf16.mxu0 %v1698_v32 }
  0x37   :  { %639 = vmatpush1.bf16.msra.mxu0 %v1696_v33 }
  0x38   :  { %640 = vmatprep.subr.bf16.mxu0 %v1704_v34 }
  0x3b   :  { %641 = vmatpush1.bf16.msra.mxu0 %v1702_v35 }
  0x3c   :  { %642 = vmatprep.subr.bf16.mxu0 %v1710_v36 }
  0x3f   :  { %643 = vmatpush1.bf16.msra.mxu0 %v1708_v37 }
  0x40   :  { %644 = vmatprep.subr.bf16.mxu0 %v1716_v38 }
  0x43   :  { %645 = vmatpush1.bf16.msra.mxu0 %v1714_v39 }
  0x44   :  { %646 = vmatprep.subr.bf16.mxu0 %v1722_v40 }
  0x47   :  { %647 = vmatpush1.bf16.msra.mxu0 %v1720_v41 }
  0xd2   :  { %v143_v42 = vpop.f32.mrf.mxu0 }
  0xd3   :  { %v245_v43 = vpop.f32.mrf.mxu1 }
  0xd4   :  { %v145_v44 = vpop.f32.mrf.mxu0  ;;  %v273_v59 = vrot.slane %v245_v43, 1 }
  0xd5   :  { %v247_v45 = vpop.f32.mrf.mxu1 }
  0xd6   :  { %v147_v46 = vpop.f32.mrf.mxu0  ;;  %v276_v0 = vrot.slane %v247_v45, 1 }
  0xd7   :  { %v249_v47 = vpop.f32.mrf.mxu1 }
  0xd8   :  { %v149_v48 = vpop.f32.mrf.mxu0  ;;  %v274_v60 = vrot.slane %v249_v47, 1 }
  0xd9   :  { %v251_v49 = vpop.f32.mrf.mxu1 }
  0xda   :  { %v153_v50 = vpop.f32.mrf.mxu0  ;;  %v277_v1 = vrot.slane %v251_v49, 1  ;;  %v275_v4 = vsel %vm272_vm2, %v273_v59, %v274_v60  ;;  %v1803_v59 = vmov 65535  }
  0xdb   :  { %v255_v51 = vpop.f32.mrf.mxu1  ;;  %v295_v12 = vadd.f32 %v275_v4, %v143_v42 }
  0xdc   :  { %v155_v52 = vpop.f32.mrf.mxu0  ;;  %v279_v5 = vrot.slane %v255_v51, 1  ;;  %v278_v13 = vsel %vm272_vm2, %v276_v0, %v277_v1 }
  0xdd   :  { %v257_v54 = vpop.f32.mrf.mxu1  ;;  %v296_v29 = vadd.f32 %v278_v13, %v145_v44  ;;  %v1687_v13 = vld [vmem:[%s2240_s4 + $0xf0] ss:$8 sps:$4 sm:$0xff]  }
  0xde   :  { %v157_v53 = vpop.f32.mrf.mxu0  ;;  %v281_v62 = vrot.slane %v257_v54, 1  ;;  %v280_v15 = vsel %vm272_vm2, %v274_v60, %v279_v5  ;;  %v491_v60 = vsel %vm413_vm3, 4294967295, %v1803_v59 }
  0xdf   :  { %v259_v57 = vpop.f32.mrf.mxu1  ;;  %v297_v30 = vadd.f32 %v280_v15, %v147_v46  ;;  %v1693_v15 = vld [vmem:[%s2240_s4 + $0xe0] ss:$8 sps:$4 sm:$0xff]  }
  0xe0   :  { %v159_v55 = vpop.f32.mrf.mxu0  ;;  %v283_v6 = vrot.slane %v259_v57, 1  ;;  %v282_v9 = vsel %vm272_vm2, %v277_v1, %v281_v62 }
  0xe1   :  { %v261_v63 = vpop.f32.mrf.mxu1  ;;  %v298_v19 = vadd.f32 %v282_v9, %v149_v48 }
  0xe2   :  { %v386_v56 = vpop.f32.mrf.mxu0  ;;  %v285_v7 = vrot.slane %v261_v63, 1  ;;  %v284_v20 = vsel %vm272_vm2, %v279_v5, %v283_v6  ;;  %v301_v31 = vadd.f32 %v283_v6, %v157_v53  ;;  %v1430_v53 = vld [vmem:[%s2238_s2] ss:$0 sm:$0xff] }
  0xe3   :  { %v414_v22 = vrot.slane %v386_v56, 2  ;;  %v299_v38 = vadd.f32 %v284_v20, %v153_v50  ;;  %v1713_v20 = vld [vmem:[%s2240_s4 + $0xb4] ss:$8 sps:$4 sm:$0xff]  }
  0xe4   :  { %v388_v58 = vpop.f32.mrf.mxu0  ;;  %v286_v21 = vsel %vm272_vm2, %v281_v62, %v285_v7  ;;  %v302_v34 = vadd.f32 %v285_v7, %v159_v55 }
  0xe5   :  { %v417_v16 = vrot.slane %v388_v58, 2  ;;  %v300_v39 = vadd.f32 %v286_v21, %v155_v52  ;;  %v1711_v21 = vld [vmem:[%s2240_s4 + $0xb0] ss:$8 sps:$4 sm:$0xff]  }
  0xe6   :  { %v390_v61 = vpop.f32.mrf.mxu0 }
  0xe7   :  { %v415_v17 = vrot.slane %v390_v61, 2 }
  0xe8   :  { %v392_v3 = vpop.f32.mrf.mxu0 }
  0xe9   :  { %v418_v10 = vrot.slane %v392_v3, 2  ;;  %v416_v35 = vsel %vm413_vm3, %v414_v22, %v415_v17  ;;  %v492_v3 = vsel %vm272_vm2, %v491_v60, 0  ;;  %v1719_v22 = vld [vmem:[%s2240_s4 + $0xa4] ss:$8 sps:$4 sm:$0xff]  }
  0xea   :  { %v396_v8 = vpop.f32.mrf.mxu0  ;;  %v436_v47 = vadd.f32 %v416_v35, %v295_v12  ;;  %v1683_v12 = vld [vmem:[%s2239_s3] sm:$0x7f]   ;;  %v1732_v35 = vld [vmem:[%s2240_s4 + $0x170] ss:$8 sps:$4 sm:$0xff]  }
  0xeb   :  { %v420_v11 = vrot.slane %v396_v8, 2  ;;  %v419_v24 = vsel %vm413_vm3, %v417_v16, %v418_v10  ;;  %v1701_v16 = vld [vmem:[%s2240_s4 + $0xd4] ss:$8 sps:$4 sm:$0xff]  }
  0xec   :  { %v398_v14 = vpop.f32.mrf.mxu0  ;;  %v437_v40 = vadd.f32 %v419_v24, %v296_v29  ;;  %v1725_v24 = vld [vmem:[%s2240_s4 + $0x94] ss:$8 sps:$4 sm:$0xff]   ;;  %v1731_v29 = vld [vmem:[%s2240_s4 + $0x84] ss:$8 sps:$4 sm:$0xff]  }
  0xed   :  { %v422_v18 = vrot.slane %v398_v14, 2  ;;  %v421_v25 = vsel %vm413_vm3, %v415_v17, %v420_v11  ;;  %v1695_v14 = vld [vmem:[%s2240_s4 + $0xe4] ss:$8 sps:$4 sm:$0xff]   ;;  %v1699_v17 = vld [vmem:[%s2240_s4 + $0xd0] ss:$8 sps:$4 sm:$0xff]  }
  0xee   :  { %v400_v23 = vpop.f32.mrf.mxu0  ;;  %v438_v41 = vadd.f32 %v421_v25, %v297_v30  ;;  %v444_v51 = vmax.f32 %v436_v47, %v437_v40  ;;  %v1723_v25 = vld [vmem:[%s2240_s4 + $0x90] ss:$8 sps:$4 sm:$0xff]   ;;  %v1729_v30 = vld [vmem:[%s2240_s4 + $0x80] ss:$8 sps:$4 sm:$0xff]   ;;  %v1740_v40 = vld [vmem:[%s2240_s4 + $0x154] ss:$8 sps:$4 sm:$0xff]  }
  0xef   :  { %v423_v26 = vsel %vm413_vm3, %v418_v10, %v422_v18  ;;  %v424_v28 = vrot.slane %v400_v23, 2  ;;  %v1689_v10 = vld [vmem:[%s2240_s4 + $0xf4] ss:$8 sps:$4 sm:$0xff]   ;;  %v1717_v23 = vld [vmem:[%s2240_s4 + $0xa0] ss:$8 sps:$4 sm:$0xff]  }
  0xf0   :  { %v439_v32 = vadd.f32 %v423_v26, %v298_v19  ;;  %v402_v33 = vpop.f32.mrf.mxu0  ;;  %v455_v57 = vadd.f32 %v1430_v53, %v444_v51  ;;  %v1705_v19 = vld [vmem:[%s2240_s4 + $0xc0] ss:$8 sps:$4 sm:$0xff]   ;;  %v1728_v26 = vld [vmem:[%s2240_s4 + $0x4] ss:$8 sps:$4 sm:$0xff]  }
  0xf1   :  { %v425_v36 = vsel %vm413_vm3, %v420_v11, %v424_v28  ;;  %v426_v37 = vrot.slane %v402_v33, 2  ;;  %v442_v42 = vadd.f32 %v424_v28, %v301_v31  ;;  %v1726_v28 = vld [vmem:[%s2240_s4] ss:$8 sps:$4 sm:$0xff]   ;;  %648 = vmatprep.subr.bf16.mxu0 %v1728_v26  ;;  %v1734_v31 = vld [vmem:[%s2240_s4 + $0x174] ss:$8 sps:$4 sm:$0xff]  }
  0xf2   :  { %v445_v44 = vmax.f32 %v438_v41, %v439_v32  ;;  %v440_v46 = vadd.f32 %v425_v36, %v299_v38  ;;  %v463_v1 = vrot.slane %v455_v57, 1  ;;  %649 = vmatpush1.bf16.msra.mxu0 %v1726_v28  ;;  %v1738_v41 = vld [vmem:[%s2240_s4 + $0x150] ss:$8 sps:$4 sm:$0xff]   ;;  %v1749_v47 = vld [vmem:[%s2240_s4 + $0x124] ss:$8 sps:$4 sm:$0xff]  }
  0xf3   :  { %v427_v43 = vsel %vm413_vm3, %v422_v18, %v426_v37  ;;  %v443_v45 = vadd.f32 %v426_v37, %v302_v34  ;;  %v1707_v18 = vld [vmem:[%s2240_s4 + $0xc4] ss:$8 sps:$4 sm:$0xff]   ;;  %932 = vmatprep.subr.bf16.mxu0 %v1734_v31  ;;  %v1753_v51 = vld [vmem:[%s2240_s4 + $0x100] ss:$8 sps:$4 sm:$0xff]  }
  0xf4   :  { %v441_v48 = vadd.f32 %v427_v43, %v300_v39  ;;  %v456_v50 = vadd.f32 %v1430_v53, %v445_v44  ;;  %v1737_v37 = vld [vmem:[%s2240_s4 + $0x164] ss:$8 sps:$4 sm:$0xff]   ;;  %v1735_v39 = vld [vmem:[%s2240_s4 + $0x160] ss:$8 sps:$4 sm:$0xff]   ;;  %v1746_v43 = vld [vmem:[%s2240_s4 + $0x134] ss:$8 sps:$4 sm:$0xff]  }
  0xf5   :  { %v447_v49 = vmax.f32 %v442_v42, %v443_v45  ;;  %v1743_v42 = vld [vmem:[%s2240_s4 + $0x144] ss:$8 sps:$4 sm:$0xff]   ;;  %v1744_v45 = vld [vmem:[%s2240_s4 + $0x130] ss:$8 sps:$4 sm:$0xff]   ;;  %v1747_v44 = vld [vmem:[%s2240_s4 + $0x120] ss:$8 sps:$4 sm:$0xff]  }
  0xf6   :  { %v446_v54 = vmax.f32 %v440_v46, %v441_v48  ;;  %v464_v61 = vrot.slane %v456_v50, 1  ;;  %v1752_v46 = vld [vmem:[%s2240_s4 + $0x114] ss:$8 sps:$4 sm:$0xff]   ;;  %v1750_v48 = vld [vmem:[%s2240_s4 + $0x110] ss:$8 sps:$4 sm:$0xff]  }
  0xf7   :  { %v458_v55 = vadd.f32 %v1430_v53, %v447_v49  ;;  %v1755_v49 = vld [vmem:[%s2240_s4 + $0x104] ss:$8 sps:$4 sm:$0xff]  }
  0xf8   :  { %v457_v52 = vadd.f32 %v1430_v53, %v446_v54  ;;  %v465_v6 = vsel %vm272_vm2, %v463_v1, %v464_v61  ;;  %v1757_v53 = vld [vmem:[%s2243_s7 + $0x38] sm:$0xff]   ;;  %v1759_v54 = vld [vmem:[%s2243_s7 + $0x30] sm:$0xff]  }
  0xf9   :  { %v468_v56 = vrot.slane %v458_v55, 1  ;;  %v474_v9 = vmax.f32 %v455_v57, %v465_v6  ;;  %v1769_v57 = vld [vmem:[%s2243_s7 + $0x8] sm:$0xff]  }
  0xfa   :  { %v466_v58 = vrot.slane %v457_v52, 1 }
  0xfb   :  { %v477_v63 = vmax.f32 %v458_v55, %v468_v56  ;;  %v1761_v55 = vld [vmem:[%s2243_s7 + $0x28] sm:$0xff]  }
  0xfc   :  { %v469_v62 = vsel %vm272_vm2, %v466_v58, %v468_v56  ;;  %v467_v4 = vsel %vm272_vm2, %v464_v61, %v466_v58  ;;  %v1767_v56 = vld [vmem:[%s2243_s7 + $0x10] sm:$0xff]  }
  0xfd   :  { %v476_v0 = vmax.f32 %v457_v52, %v469_v62  ;;  %v475_v8 = vmax.f32 %v456_v50, %v467_v4  ;;  %v1763_v50 = vld [vmem:[%s2243_s7 + $0x20] sm:$0xff]   ;;  %v1765_v52 = vld [vmem:[%s2243_s7 + $0x18] sm:$0xff]  }
  0xff   :  { %v481_v5 = vpack.c.bf16 %v477_v63, %v476_v0  ;;  %v480_v11 = vpack.c.bf16 %v475_v8, %v474_v9 }
 0x101   :  { %v494_v7 = vand.u32 %v492_v3, %v481_v5 }
 0x103   :  { %1579 = vmatpush3.bf16.msra.mxu1 %v494_v7 }
 0x104   :  { %1580 = vmatprep.subr.bf16.mxu1 %v1801_v27 }
 0x107   :  { %1581 = vmatpush3.bf16.msra.mxu1 %v480_v11 }
 0x108   :  { %774 = vmatprep.subr.bf16.mxu1 %v1689_v10 }
 0x10a   :  { %1583 = vmatmul.mubr.msk.bf16.vlgmr.msra.gmra.mxu1 %vm487_vm4, %v1683_v12 }
 0x10b   :  { %775 = vmatpush1.bf16.msra.mxu1 %v1687_v13  ;;  %806 = vmatprep.mubr.bf16.mxu1 %v1800_v2 }
 0x10c   :  { %776 = vmatprep.subr.bf16.mxu1 %v1695_v14 }
 0x10f   :  { %777 = vmatpush1.bf16.msra.mxu1 %v1693_v15 }
 0x110   :  { %778 = vmatprep.subr.bf16.mxu1 %v1701_v16 }
 0x113   :  { %779 = vmatpush1.bf16.msra.mxu1 %v1699_v17 }
 0x114   :  { %780 = vmatprep.subr.bf16.mxu1 %v1707_v18 }
 0x117   :  { %781 = vmatpush1.bf16.msra.mxu1 %v1705_v19 }
 0x118   :  { %782 = vmatprep.subr.bf16.mxu1 %v1713_v20 }
 0x11b   :  { %783 = vmatpush1.bf16.msra.mxu1 %v1711_v21 }
 0x11c   :  { %784 = vmatprep.subr.bf16.mxu1 %v1719_v22 }
 0x11f   :  { %785 = vmatpush1.bf16.msra.mxu1 %v1717_v23 }
 0x120   :  { %786 = vmatprep.subr.bf16.mxu1 %v1725_v24 }
 0x123   :  { %787 = vmatpush1.bf16.msra.mxu1 %v1723_v25 }
 0x124   :  { %788 = vmatprep.subr.bf16.mxu1 %v1731_v29  ;;  %v1513_v29 = vld [vmem:[%s2241_s5] ss:$0 sm:$0xff] }
 0x127   :  { %789 = vmatpush1.bf16.msra.mxu1 %v1729_v30 }
 0x128   :  { %1586 = vmatprep.subr.bf16.mxu1 %v1801_v27 }
 0x1ca   :  { %v530_v32 = vpop.f32.mrf.mxu1 }
 0x1cc   :  { %v1584_v33 = vpop.f32.mrf.mxu1 }
 0x1ce   :  { %v533_v34 = vpop.f32.mrf.mxu1 }
 0x1cf   :  { %v537_v36 = vpack.c.bf16 %v533_v34, %v530_v32 }
 0x1d0   :  { %v1585_v38 = vpop.f32.mrf.mxu1 }
 0x1d1   :  { %667 = vmatmul.mubr.bf16.vlgmr.msra.gmra.mxu0 %v537_v36  ;;  %807 = vmatmul.mubr.bf16.vlgmr.msra.gmra.mxu1 %v537_v36 }
 0x1d2   :  { %933 = vmatpush1.bf16.msra.mxu0 %v1732_v35  ;;  %964 = vmatprep.mubr.bf16.mxu0 %v1800_v2  ;;  %v1741_v2 = vld [vmem:[%s2240_s4 + $0x140] ss:$8 sps:$4 sm:$0xff]  }
 0x1d3   :  { %934 = vmatprep.subr.bf16.mxu0 %v1737_v37  ;;  %1588 = vmatprep.mubr.msk.bf16.mxu1 %vm1802_vm1, %v1801_v27 }
 0x1d6   :  { %935 = vmatpush1.bf16.msra.mxu0 %v1735_v39 }
 0x1d7   :  { %936 = vmatprep.subr.bf16.mxu0 %v1740_v40 }
 0x1da   :  { %937 = vmatpush1.bf16.msra.mxu0 %v1738_v41 }
 0x1db   :  { %938 = vmatprep.subr.bf16.mxu0 %v1743_v42 }
 0x1de   :  { %939 = vmatpush1.bf16.msra.mxu0 %v1741_v2  ;;  %v1013_v2 = vld [vmem:[%s2242_s6] sm:$0x3] }
 0x1df   :  { %940 = vmatprep.subr.bf16.mxu0 %v1746_v43  ;;  %v1756_v43 = vld [vmem:[%s2243_s7 + $0x78] sm:$0xff]  }
 0x1e2   :  { %941 = vmatpush1.bf16.msra.mxu0 %v1744_v45  ;;  %v1760_v45 = vld [vmem:[%s2243_s7 + $0x68] sm:$0xff]  }
 0x1e3   :  { %942 = vmatprep.subr.bf16.mxu0 %v1749_v47  ;;  %v1762_v47 = vld [vmem:[%s2243_s7 + $0x60] sm:$0xff]  }
 0x1e6   :  { %943 = vmatpush1.bf16.msra.mxu0 %v1747_v44  ;;  %v1764_v44 = vld [vmem:[%s2243_s7 + $0x58] sm:$0xff]  }
 0x1e7   :  { %944 = vmatprep.subr.bf16.mxu0 %v1752_v46  ;;  %v1766_v46 = vld [vmem:[%s2243_s7 + $0x50] sm:$0xff]  }
 0x1ea   :  { %945 = vmatpush1.bf16.msra.mxu0 %v1750_v48  ;;  %v1768_v48 = vld [vmem:[%s2243_s7 + $0x48] sm:$0xff]  }
 0x1eb   :  { %946 = vmatprep.subr.bf16.mxu0 %v1755_v49  ;;  %v1771_v49 = vld [vmem:[%s2243_s7] sm:$0xff]  }
 0x1ee   :  { %947 = vmatpush1.bf16.msra.mxu0 %v1753_v51  ;;  %v1770_v51 = vld [vmem:[%s2243_s7 + $0x40] sm:$0xff]  }
 0x1ef   :  { %1612 = vmatprep.subr.bf16.mxu0 %v1801_v27 }
 0x1f1   :  { %965 = vmatmul.mubr.bf16.vlgmr.msra.gmra.mxu0 %v537_v36  ;;  %v1020_v36 = vsel %vm1019_vm5, 4294967295, %v1803_v59  ;;  %v1758_v59 = vld [vmem:[%s2243_s7 + $0x70] sm:$0xff]  }
 0x1f2   :  { %1628 = vmatprep.mubr.msk.bf16.mxu0 %vm1802_vm1, %v1801_v27  ;;  %1613 = vmatpush3.bf16.msra.mxu0 %v1757_v53  ;;  %v1021_v40 = vsel %vm413_vm3, %v1020_v36, 0 }
 0x1f3   :  { %1614 = vmatprep.subr.bf16.mxu0 %v1801_v27 }
 0x1f6   :  { %1615 = vmatpush3.bf16.msra.mxu0 %v1759_v54 }
 0x1f7   :  { %1616 = vmatprep.subr.bf16.mxu0 %v1801_v27 }
 0x1fa   :  { %1617 = vmatpush3.bf16.msra.mxu0 %v1761_v55 }
 0x1fb   :  { %1618 = vmatprep.subr.bf16.mxu0 %v1801_v27 }
 0x1fe   :  { %1619 = vmatpush3.bf16.msra.mxu0 %v1763_v50 }
 0x1ff   :  { %1620 = vmatprep.subr.bf16.mxu0 %v1801_v27 }
 0x202   :  { %1621 = vmatpush3.bf16.msra.mxu0 %v1765_v52 }
 0x203   :  { %1622 = vmatprep.subr.bf16.mxu0 %v1801_v27 }
 0x206   :  { %1623 = vmatpush3.bf16.msra.mxu0 %v1767_v56 }
 0x207   :  { %1624 = vmatprep.subr.bf16.mxu0 %v1801_v27 }
 0x20a   :  { %1625 = vmatpush3.bf16.msra.mxu0 %v1769_v57  ;;  %v1772_v57 = vld [vmem:[%s2245_s9 + $0x8] sm:$0xff]  }
 0x20b   :  { %1626 = vmatprep.subr.bf16.mxu0 %v1801_v27 }
 0x20e   :  { %1627 = vmatpush3.bf16.msra.mxu0 %v1771_v49 }
 0x291   :  { %v668_v58 = vpop.f32.mrf.mxu0  ;;  %v808_v60 = vpop.f32.mrf.mxu1 }
 0x292   :  { %v821_v8 = vrot.slane %v808_v60, 1 }
 0x293   :  { %v670_v61 = vpop.f32.mrf.mxu0  ;;  %v810_v62 = vpop.f32.mrf.mxu1 }
 0x294   :  { %v824_v9 = vrot.slane %v810_v62, 1  ;;  %v1547_v62 = vld [vmem:[%s2244_s8] ss:$0 sm:$0xff]  ;;  %s1804_s8 = smov [#allocation2]  }
 0x295   :  { %v672_v63 = vpop.f32.mrf.mxu0  ;;  %v812_v0 = vpop.f32.mrf.mxu1 }
 0x296   :  { %v822_v5 = vrot.slane %v812_v0, 1 }
 0x297   :  { %v674_v1 = vpop.f32.mrf.mxu0  ;;  %v814_v3 = vpop.f32.mrf.mxu1 }
 0x298   :  { %v825_v6 = vrot.slane %v814_v3, 1  ;;  %v823_v11 = vsel %vm272_vm2, %v821_v8, %v822_v5  ;;  %v833_v15 = vadd.f32 %v822_v5, %v672_v63 }
 0x299   :  { %v831_v21 = vadd.f32 %v823_v11, %v668_v58  ;;  %v1773_v58 = vld [vmem:[%s2245_s9] sm:$0xff]  }
 0x29a   :  { %v826_v12 = vsel %vm272_vm2, %v824_v9, %v825_v6  ;;  %v834_v17 = vadd.f32 %v825_v6, %v674_v1  ;;  %v1548_v9 = vld [vmem:[%s2246_s10] ss:$0 sm:$0xff]  ;;  %s1374_s10 = sshll.u32 %s1804_s8, 4  ;;  %s1375_s10 = int_to_ptr.vmem [resolvable:$true] %s1374_s10 }
 0x29b   :  { %v832_v22 = vadd.f32 %v826_v12, %v670_v61  ;;  %s1778_s12 = scalar_lea.vmem %s1375_s10, 32  ;;  %p1783_p1 = scmp.lt.s32.totalorder %s1375_s10, %s1375_s10 }
 0x29c   :  { %p1779_p0 = scmp.ne.s32.totalorder %s1375_s10, %s1778_s12  ;;  %p1784_p2 = scmp.lt.s32.totalorder %s1778_s12, %s1778_s12 }
 0x29e   :  { %p1785_p3 = por %p1784_p2, %p1783_p1 }
 0x2a0   :  { %p1786_p4 = pnand %p1785_p3, %p1779_p0 }
 0x2b1   :  { %v966_v4 = vpop.f32.mrf.mxu0 }
 0x2b2   :  { %v979_v13 = vrot.slane %v966_v4, 2 }
 0x2b3   :  { %v968_v7 = vpop.f32.mrf.mxu0 }
 0x2b4   :  { %v982_v18 = vrot.slane %v968_v7, 2 }
 0x2b5   :  { %v970_v10 = vpop.f32.mrf.mxu0 }
 0x2b6   :  { %v980_v14 = vrot.slane %v970_v10, 2 }
 0x2b7   :  { %v972_v16 = vpop.f32.mrf.mxu0 }
 0x2b8   :  { %v981_v19 = vsel %vm413_vm3, %v979_v13, %v980_v14  ;;  %v983_v20 = vrot.slane %v972_v16, 2  ;;  %v991_v23 = vadd.f32 %v980_v14, %v833_v15 }
 0x2b9   :  { %v989_v26 = vadd.f32 %v981_v19, %v831_v21 }
 0x2ba   :  { %v984_v24 = vsel %vm413_vm3, %v982_v18, %v983_v20  ;;  %v992_v25 = vadd.f32 %v983_v20, %v834_v17 }
 0x2bb   :  { %v990_v28 = vadd.f32 %v984_v24, %v832_v22 }
 0x2bc   :  { %v994_v30 = vmax.f32 %v991_v23, %v992_v25 }
 0x2bd   :  { %v993_v31 = vmax.f32 %v989_v26, %v990_v28 }
 0x2be   :  { %v1003_v32 = vadd.f32 %v1513_v29, %v994_v30 }
 0x2bf   :  { %v1002_v33 = vadd.f32 %v1513_v29, %v993_v31 }
 0x2c0   :  { %v1007_v34 = vrot.slane %v1003_v32, 1 }
 0x2c1   :  { %v1006_v35 = vrot.slane %v1002_v33, 1 }
 0x2c2   :  { %v1012_v39 = vmax.f32 %v1003_v32, %v1007_v34 }
 0x2c3   :  { %v1008_v37 = vsel %vm272_vm2, %v1006_v35, %v1007_v34 }
 0x2c4   :  { %v1011_v38 = vmax.f32 %v1002_v33, %v1008_v37 }
 0x2c6   :  { %v1014_v41 = vpack.c.bf16 %v1012_v39, %v1011_v38 }
 0x2c8   :  { %v1023_v42 = vand.u32 %v1021_v40, %v1014_v41 }
 0x2ca   :  { %1587 = vmatpush3.bf16.msra.mxu1 %v1023_v42 }
 0x2cb   :  { %1592 = vmatprep.subr.bf16.mxu1 %v1801_v27 }
 0x2cd   :  { %1589 = vmatmul.mubr.msk.bf16.vlgmr.msra.gmra.mxu1 %vm1015_vm6, %v1013_v2 }
 0x2ce   :  { %1593 = vmatpush3.bf16.msra.mxu1 %v1756_v43  ;;  %1608 = vmatprep.mubr.msk.bf16.mxu1 %vm1802_vm1, %v1801_v27 }
 0x2cf   :  { %1594 = vmatprep.subr.bf16.mxu1 %v1801_v27 }
 0x2d2   :  { %1595 = vmatpush3.bf16.msra.mxu1 %v1758_v59 }
 0x2d3   :  { %1596 = vmatprep.subr.bf16.mxu1 %v1801_v27 }
 0x2d6   :  { %1597 = vmatpush3.bf16.msra.mxu1 %v1760_v45 }
 0x2d7   :  { %1598 = vmatprep.subr.bf16.mxu1 %v1801_v27 }
 0x2da   :  { %1599 = vmatpush3.bf16.msra.mxu1 %v1762_v47 }
 0x2db   :  { %1600 = vmatprep.subr.bf16.mxu1 %v1801_v27 }
 0x2de   :  { %1601 = vmatpush3.bf16.msra.mxu1 %v1764_v44 }
 0x2df   :  { %1602 = vmatprep.subr.bf16.mxu1 %v1801_v27 }
 0x2e2   :  { %1603 = vmatpush3.bf16.msra.mxu1 %v1766_v46 }
 0x2e3   :  { %1604 = vmatprep.subr.bf16.mxu1 %v1801_v27 }
 0x2e6   :  { %1605 = vmatpush3.bf16.msra.mxu1 %v1768_v48 }
 0x2e7   :  { %1606 = vmatprep.subr.bf16.mxu1 %v1801_v27 }
 0x2ea   :  { %1607 = vmatpush3.bf16.msra.mxu1 %v1770_v51 }
 0x2eb   :  { %1632 = vmatprep.subr.bf16.mxu1 %v1801_v27 }
 0x38d   :  { %v1059_v53 = vpop.f32.mrf.mxu1 }
 0x38e   :  { %v1065_v54 = vpack.c.bf16 %v1059_v53, %v1059_v53 }
 0x38f   :  { %v1590_v55 = vpop.f32.mrf.mxu1 }
 0x390   :  { %v1100_v50 = vrot.slane %v1065_v54, 1  ;;  %1629 = vmatmul.mubr.bf16.vlgmr.msra.gmra.mxu0 %v1065_v54 }
 0x391   :  { %v1062_v52 = vpop.f32.mrf.mxu1 }
 0x392   :  { %1609 = vmatmul.mubr.bf16.vlgmr.msra.gmra.mxu1 %v1100_v50 }
 0x393   :  { %v1591_v56 = vpop.f32.mrf.mxu1  ;;  %1636 = vmatprep.mubr.msk.bf16.mxu1 %vm1802_vm1, %v1801_v27  ;;  %1633 = vmatpush3.bf16.msra.mxu1 %v1772_v57 }
 0x394   :  { %1634 = vmatprep.subr.bf16.mxu1 %v1801_v27 }
 0x397   :  { %1635 = vmatpush3.bf16.msra.mxu1 %v1773_v58 }
 0x450   :  { %v1272_v60 = vpop.f32.mrf.mxu0 }
 0x452   :  { %v1184_v61 = vpop.f32.mrf.mxu1  ;;  %v1630_v63 = vpop.f32.mrf.mxu0 }
 0x453   :  { %v1273_v0 = vadd.f32 %v1272_v60, %v1184_v61 }
 0x454   :  { %v1610_v1 = vpop.f32.mrf.mxu1  ;;  %v1275_v3 = vpop.f32.mrf.mxu0 }
 0x455   :  { %v1285_v4 = vadd.f32 %v1547_v62, %v1273_v0 }
 0x456   :  { %v1187_v5 = vpop.f32.mrf.mxu1  ;;  %v1631_v6 = vpop.f32.mrf.mxu0 }
 0x457   :  { %v1286_v7 = vmax.f32 %v1285_v4, 0.0 }
 0x458   :  { %v1611_v27 = vpop.f32.mrf.mxu1 }
 0x459   :  { %v1287_v8 = vpack.c.bf16 %v1286_v7, %v1286_v7 }
 0x45b   :  { %1637 = vmatmul.mubr.msk.bf16.vlgmr.msra.gmra.mxu1 %vm1311_vm7, %v1287_v8 }
 0x51b   :  { %v1349_v10 = vpop.f32.mrf.mxu1 }
 0x51c   :  { %v1350_v11 = vadd.f32 %v1548_v9, %v1349_v10 }
 0x51d   :  { %v1638_v12 = vpop.f32.mrf.mxu1 }
 0x51e   :  { %v1356_v13 = vsel %vm1355_vm8, %v1350_v11, -inf }
 0x51f   :  { %1357 = vmax.xlane.f32.xlu0 %v1356_v13  ;;  %v1352_v14 = vpop.f32.mrf.mxu1 }
 0x521   :  { %v1639_v15 = vpop.f32.mrf.mxu1 }
 0x5a8   :  { %v1358_v16 = vpop.xlane.xlu0 %1357 }
 0x5a9   :  { %v1359_v17 = vsub.f32 %v1350_v11, %v1358_v16 }
 0x5ab   :  { %v1360_v18 = vmul.f32 1.442695, %v1359_v17 }
 0x5ad   :  { %1774 = vpow2.f32 %v1360_v18 }
 0x5ba   :  { %v1775_v19 = vpop.eup %1774 }
 0x5bb   :  { %v1362_v20 = vsel %vm1355_vm8, %v1775_v19, 0.0 }
 0x5bc   :  { %1363 = vadd.xlane.f32.xlu0 %v1362_v20 }
 0x645   :  { %v1364_v21 = vpop.xlane.xlu0 %1363 }
 0x646   :  { %1776 = vrcp.f32 %v1364_v21 }
 0x653   :  { %v1777_v22 = vpop.eup %1776 }
 0x654   :  { %v1366_v23 = vmul.f32 %v1777_v22, %v1775_v19 }
 0x656   :  { %1367 = vst.msk [vmem:[#allocation2] sm:$0x3] %vm1355_vm8, %v1366_v23 }
 0x657   :  { %1789 = shalt.err (!%p1786_p4)
}
 0x658   :  { %1377 = dma.vmem_to_hbm [thread:$0]  %s1375_s10, 32, %s2247_s11, [#allocation3]  }
 0x659   :  { %1798 = dma.done.wait [#allocation3], 32  }
 0x65a   :  { %1799 = vsyncadd [#allocation3], 4294967264 }
 0x65b   :  { %1381 = vsyncpa [#allocation3], 1 }

</bundles_post_ra>
